<compile_context>
chip_gen: v5e
topology: v5e:2x2
jax: 0.10.0
libtpu: 0.0.40
codegen_flags: <defaults>
</compile_context>

<pallas_src>
import jax
import jax.numpy as jnp
from jax import lax
from jax.experimental import pallas as pl
from jax.experimental.pallas import tpu as pltpu  # noqa: F401  (TPU-specific tuning hooks)

# ----------------------------- model dims (small) -----------------------------
B = 2               # batch
C, IMG = 4, 16      # image channels / spatial
PATCH = 8           # patch size for the stand-in vision model
VISION_WIDTH = 24
EMBED_DIM = 16
CONTEXT_LEN = 8     # S
VOCAB = 64
WIDTH = 32          # transformer_width (D)
HEADS = 4
LAYERS = 2

EPS = 1e-5
PAD = 128           # lane-dense output width (outputs padded to 128 lanes)
ROWS_OUT = 8        # sublane-dense output rows (full 8x128 vreg stores)

LAYER_KEYS = ("ln1_g", "ln1_b", "w_qkv", "b_qkv", "w_out", "b_out",
              "ln2_g", "ln2_b", "w_fc", "b_fc", "w_pr", "b_pr")


# ------------------------------ in-kernel helpers ------------------------------
def _layer_norm(x, g, b):
    mu = jnp.mean(x, axis=-1, keepdims=True)
    var = jnp.mean((x - mu) ** 2, axis=-1, keepdims=True)
    return (x - mu) * lax.rsqrt(var + EPS) * g + b


def _dot(a, b):
    return jnp.dot(a, b, preferred_element_type=jnp.float32)


def _dot_nt(a, b):
    # (M, K) contracted against (N, K) -> (M, N); no explicit in-kernel transpose copy.
    return lax.dot_general(a, b, (((1,), (1,)), ((), ())),
                           preferred_element_type=jnp.float32)


# ------------------------------ fused text kernel -------------------------------
def make_text_kernel(num_layers, Bb, S, D, H):
    hd = D // H
    N = Bb * S
    npl = len(LAYER_KEYS)

    def kernel(*refs):
        out_ref = refs[-1]
        text_bs_ref, text_col_ref, emb_ref, pos_ref, mask_ref = refs[:5]
        base = 5
        tail = base + num_layers * npl
        lnf_g_ref, lnf_b_ref, proj_ref = refs[tail], refs[tail + 1], refs[tail + 2]

        # ---- token embedding as one-hot matmul (gather stays in VMEM) ----
        # TODO(synk): at real CLIP vocab sizes (~49k) switch to a scalar-prefetch
        # row gather (PrefetchScalarGridSpec + pl.Element on an HBM-resident
        # table); the one-hot matmul is only sensible at VOCAB=64.
        # (Token-id compares in f32 are exact for ids < 2^24.)
        tok_col = text_col_ref[...].astype(jnp.float32)                      # (N, 1)
        vocab_iota = lax.broadcasted_iota(jnp.float32, (N, VOCAB), 1)
        onehot = (tok_col == vocab_iota).astype(jnp.float32)                 # (N, V)
        x = _dot(onehot, emb_ref[...]) + pos_ref[...]                        # (N, D); pos pre-tiled

        mask = mask_ref[...]                                                 # (N, N), read once

        for l in range(num_layers):
            off = base + l * npl
            (ln1g, ln1b, wqkv, bqkv, wo, bo,
             ln2g, ln2b, wfc, bfc, wpr, bpr) = refs[off:off + npl]

            # --- multi-head self-attention (pre-LN, residual) ---
            h = _layer_norm(x, ln1g[...], ln1b[...])                         # (N, D)
            qkv = _dot(h, wqkv[...]) + bqkv[...]                             # (N, 3D); Q pre-scaled
            head_outs = []
            for hh in range(H):
                q = qkv[:, hh * hd:(hh + 1) * hd]                            # (N, hd)
                k = qkv[:, D + hh * hd:D + (hh + 1) * hd]                    # (N, hd)
                v = qkv[:, 2 * D + hh * hd:2 * D + (hh + 1) * hd]            # (N, hd)
                s = _dot_nt(q, k) + mask                                     # (N, N)
                s = s - jnp.max(s, axis=-1, keepdims=True)
                e = jnp.exp(s)
                p = e * pl.reciprocal(jnp.sum(e, axis=-1, keepdims=True), approx=True)
                head_outs.append(_dot(p, v))                                 # (N, hd)
            o = jnp.concatenate(head_outs, axis=-1)                          # (N, D), head-major lanes
            x = x + _dot(o, wo[...]) + bo[...]                               # single out-proj matmul

            # --- MLP with QuickGELU (pre-LN, residual) ---
            h2 = _layer_norm(x, ln2g[...], ln2b[...])
            f = _dot(h2, wfc[...]) + bfc[...]
            g = f * jax.nn.sigmoid(1.702 * f)
            x = x + _dot(g, wpr[...]) + bpr[...]

        # ---- final LN, EOT gather (FIRST argmax of token ids), text projection ----
        xf = _layer_norm(x, lnf_g_ref[...], lnf_b_ref[...])                  # (N, D)

        tok = text_bs_ref[...].astype(jnp.float32)                           # (ROWS_OUT, S); pad rows = 0
        pos_i = lax.broadcasted_iota(jnp.float32, (ROWS_OUT, S), 1)
        row_max = jnp.max(tok, axis=-1, keepdims=True)
        eot = jnp.min(jnp.where(tok == row_max, pos_i, float(S)),
                      axis=-1, keepdims=True)                                # first argmax (= torch.argmax)
        col_i = lax.broadcasted_iota(jnp.float32, (ROWS_OUT, N), 1)
        batch_i = lax.broadcasted_iota(jnp.float32, (ROWS_OUT, N), 0)
        sel = (col_i == batch_i * float(S) + eot).astype(jnp.float32)        # (ROWS_OUT, N); pad rows all-zero

        x_tok = _dot(sel, xf)                                                # (ROWS_OUT, D)
        out_ref[...] = _dot(x_tok, proj_ref[...])                            # (ROWS_OUT, PAD) full-vreg store

    return kernel


# ------------------------------ fused vision kernel -----------------------------
def vision_kernel(pool_ref, patches_ref, w_ref, b_ref, o_ref):
    # mean-pool over patches expressed as a matmul, then the pre-fused
    # (patch_embed @ image_projection) weight: two lane-dense MXU ops,
    # one unmasked (8, 128) store.
    pooled = jnp.dot(pool_ref[...], patches_ref[...],
                     preferred_element_type=jnp.float32)                     # (ROWS_OUT, patch_dim)
    o_ref[...] = jnp.dot(pooled, w_ref[...],
                         preferred_element_type=jnp.float32) + b_ref[...]    # (ROWS_OUT, PAD)


# ------------------------------- parameter init --------------------------------
def init_params(key):
    D, S, H = WIDTH, CONTEXT_LEN, HEADS
    hd = D // H
    N = B * S
    scale = hd ** -0.5
    proj_std = D ** -0.5 * (2 * LAYERS) ** -0.5
    attn_std = D ** -0.5
    fc_std = (2 * D) ** -0.5
    patch_dim = C * PATCH * PATCH
    n_patches = (IMG // PATCH) ** 2

    keys = iter(jax.random.split(key, 8 + 4 * LAYERS))

    # Block-diagonal causal additive mask over the flattened (B*S) token axis;
    # within each batch element it equals build_attention_mask(), cross-batch -inf.
    r = jnp.arange(N)
    same_b = (r[:, None] // S) == (r[None, :] // S)
    causal = (r[None, :] % S) <= (r[:, None] % S)
    mask_bd = jnp.where(same_b & causal, 0.0, -jnp.inf).astype(jnp.float32)

    # mean pool over patches as a (ROWS_OUT, B*P) matmul; rows >= B are zero
    pool = (jnp.kron(jnp.eye(B, dtype=jnp.float32),
                     jnp.ones((1, n_patches), jnp.float32)) / n_patches)
    pool_pad = jnp.zeros((ROWS_OUT, B * n_patches), jnp.float32).at[:B].set(pool)

    image_projection = (jax.random.normal(next(keys), (VISION_WIDTH, EMBED_DIM), jnp.float32)
                        * VISION_WIDTH ** -0.5)
    text_projection = (jax.random.normal(next(keys), (D, EMBED_DIM), jnp.float32)
                       * D ** -0.5)

    # stand-in vision model (patch embedding); fold patch_w / patch_b through the
    # (zero-padded to 128 lanes) image projection once at init -- the whole path
    # is linear so this is mathematically identical, and every intermediate in
    # the vision kernel becomes lane-dense.
    patch_w = (jax.random.normal(next(keys), (patch_dim, VISION_WIDTH), jnp.float32)
               * patch_dim ** -0.5)
    patch_b = jnp.zeros((1, VISION_WIDTH), jnp.float32)
    img_proj_pad = (jnp.zeros((VISION_WIDTH, PAD), jnp.float32)
                    .at[:, :EMBED_DIM].set(image_projection))
    vis_w_fused = patch_w @ img_proj_pad                                      # (patch_dim, PAD)
    vis_b_fused = patch_b @ img_proj_pad                                      # (1, PAD)

    token_embedding = jax.random.normal(next(keys), (VOCAB, D), jnp.float32) * 0.02
    positional_embedding = jax.random.normal(next(keys), (S, D), jnp.float32) * 0.01

    params = {
        # vision (fused linear chain)
        "pool_pad": pool_pad,
        "vis_w_fused": vis_w_fused,
        "vis_b_fused": vis_b_fused,
        # text
        "token_embedding": token_embedding,
        "pos_tiled": jnp.tile(positional_embedding, (B, 1)),                 # pre-tiled to (N, D)
        "lnf_g": jnp.ones((1, D), jnp.float32),
        "lnf_b": jnp.zeros((1, D), jnp.float32),
        # text projection zero-padded to 128 output lanes for lane-dense stores;
        # logical shape is (D, EMBED_DIM)
        "text_projection_pad": (jnp.zeros((D, PAD), jnp.float32)
                                .at[:, :EMBED_DIM].set(text_projection)),
        "logit_scale": jnp.array(jnp.log(1.0 / 0.07), jnp.float32),
        "mask_bd": mask_bd,
    }

    layers = []
    for _ in range(LAYERS):
        w_qkv = jax.random.normal(next(keys), (D, 3 * D), jnp.float32) * attn_std
        # fold the 1/sqrt(hd) attention scale into the Q columns (and bias) at init
        w_qkv = w_qkv.at[:, :D].multiply(scale)
        b_qkv = jnp.zeros((1, 3 * D), jnp.float32)                           # zeros, scale is a no-op
        w_out = jax.random.normal(next(keys), (D, D), jnp.float32) * proj_std
        layers.append({
            "ln1_g": jnp.ones((1, D), jnp.float32),
            "ln1_b": jnp.zeros((1, D), jnp.float32),
            "w_qkv": w_qkv,                                                  # (D, 3D) fused in-proj
            "b_qkv": b_qkv,                                                  # (1, 3D)
            "w_out": w_out,                                                  # rows grouped by head
            "b_out": jnp.zeros((1, D), jnp.float32),
            "ln2_g": jnp.ones((1, D), jnp.float32),
            "ln2_b": jnp.zeros((1, D), jnp.float32),
            "w_fc": jax.random.normal(next(keys), (D, 4 * D), jnp.float32) * fc_std,
            "b_fc": jnp.zeros((1, 4 * D), jnp.float32),
            "w_pr": jax.random.normal(next(keys), (4 * D, D), jnp.float32) * proj_std,
            "b_pr": jnp.zeros((1, D), jnp.float32),
        })
    params["layers"] = layers
    return params


# --------------------------------- forward pass --------------------------------
def clip_forward(params, image, text):
    Bb = image.shape[0]
    S = text.shape[1]
    N = Bb * S

    # ---- encode_image: one fused kernel (mean-pool matmul -> fused patch-embed/projection)
    gh, gw = IMG // PATCH, IMG // PATCH
    patches = (image.reshape(Bb, C, gh, PATCH, gw, PATCH)
                    .transpose(0, 2, 4, 1, 3, 5)
                    .reshape(Bb * gh * gw, C * PATCH * PATCH))
    # TODO(synk): at real CLIP dims add a parallel batch grid axis
    # (dimension_semantics=("parallel",)) so v7x's two TensorCores are used.
    img_out = pl.pallas_call(
        vision_kernel,
        out_shape=jax.ShapeDtypeStruct((ROWS_OUT, PAD), jnp.float32),
    )(params["pool_pad"], patches, params["vis_w_fused"], params["vis_b_fused"])
    image_embed = img_out[:Bb, :EMBED_DIM]

    # ---- encode_text: one fused kernel (embedding -> transformer -> ln_final -> EOT -> proj)
    text_pad = jnp.zeros((ROWS_OUT, S), jnp.int32).at[:Bb].set(text)         # pad rows select nothing
    text_col = text.reshape(N, 1)                                            # token ids for one-hot gather
    layer_args = []
    for lp in params["layers"]:
        layer_args.extend(lp[k] for k in LAYER_KEYS)
    # TODO(synk): for real CLIP sizes (D=512, S=77, L=12, V=49k) stream per-layer
    # weights via a layer grid axis + Buffered BlockSpecs instead of keeping all
    # weights VMEM-resident (v7x has only 64 MiB physical VMEM).
    txt_out = pl.pallas_call(
        make_text_kernel(LAYERS, Bb, S, WIDTH, HEADS),
        out_shape=jax.ShapeDtypeStruct((ROWS_OUT, PAD), jnp.float32),
    )(text_pad, text_col, params["token_embedding"], params["pos_tiled"],
      params["mask_bd"], *layer_args,
      params["lnf_g"], params["lnf_b"], params["text_projection_pad"])
    text_embed = txt_out[:Bb, :EMBED_DIM]

    return {
        "image_embed": image_embed,
        "text_embed": text_embed,
        "logit_scale": jnp.exp(params["logit_scale"]),
    }


# ------------------------------------ main --------------------------------------
if __name__ == "__main__":
    key = jax.random.PRNGKey(0)
    kp, ki, kt = jax.random.split(key, 3)
    params = init_params(kp)

    image = jax.random.normal(ki, (B, C, IMG, IMG), jnp.float32)
    text = jax.random.randint(kt, (B, CONTEXT_LEN), 0, VOCAB, dtype=jnp.int32)

    out = clip_forward(params, image, text)
    jax.block_until_ready(out)

    assert out["image_embed"].shape == (B, EMBED_DIM)
    assert out["text_embed"].shape == (B, EMBED_DIM)
    assert out["logit_scale"].shape == ()
    assert bool(jnp.all(jnp.isfinite(out["image_embed"])))
    assert bool(jnp.all(jnp.isfinite(out["text_embed"])))
    print("KERNEL_OK")
</pallas_src>

<mosaic_0001>
module attributes {stable_mosaic.version = 11 : i64} {
  func.func @vision_kernel(%arg0: memref<8x8xf32, #tpu.memory_space<vmem>>, %arg1: memref<8x256xf32, #tpu.memory_space<vmem>>, %arg2: memref<256x128xf32, #tpu.memory_space<vmem>>, %arg3: memref<1x128xf32, #tpu.memory_space<vmem>>, %arg4: memref<8x128xf32, #tpu.memory_space<vmem>>) attributes {dimension_semantics = [], scalar_prefetch = 0 : i64, scratch_operands = 0 : i64, tpu.core_type = #tpu.core_type<tc>} {
    %c0 = arith.constant 0 : index
    %c0_0 = arith.constant 0 : index
    %0 = vector.load %arg0[%c0, %c0_0] : memref<8x8xf32, #tpu.memory_space<vmem>>, vector<8x8xf32>
    %c0_1 = arith.constant 0 : index
    %c0_2 = arith.constant 0 : index
    %1 = vector.load %arg1[%c0_1, %c0_2] : memref<8x256xf32, #tpu.memory_space<vmem>>, vector<8x256xf32>
    %cst = arith.constant dense<0.000000e+00> : vector<8x256xf32>
    %2 = tpu.matmul %0, %1, %cst {dimension_numbers = #tpu.dot_dimension_numbers<[1], [0], [0], [1], [0, 0, 1, 1], [], []>} : vector<8x8xf32>, vector<8x256xf32>, vector<8x256xf32> -> vector<8x256xf32>
    %c0_3 = arith.constant 0 : index
    %c0_4 = arith.constant 0 : index
    %3 = vector.load %arg2[%c0_3, %c0_4] : memref<256x128xf32, #tpu.memory_space<vmem>>, vector<256x128xf32>
    %cst_5 = arith.constant dense<0.000000e+00> : vector<8x128xf32>
    %4 = tpu.matmul %2, %3, %cst_5 {dimension_numbers = #tpu.dot_dimension_numbers<[1], [0], [0], [1], [0, 0, 1, 1], [], []>} : vector<8x256xf32>, vector<256x128xf32>, vector<8x128xf32> -> vector<8x128xf32>
    %c0_6 = arith.constant 0 : index
    %c0_7 = arith.constant 0 : index
    %5 = vector.load %arg3[%c0_6, %c0_7] : memref<1x128xf32, #tpu.memory_space<vmem>>, vector<1x128xf32>
    %6 = vector.broadcast %5 : vector<1x128xf32> to vector<8x128xf32>
    %7 = arith.addf %4, %6 : vector<8x128xf32>
    %c0_8 = arith.constant 0 : index
    %c0_9 = arith.constant 0 : index
    %8 = vector.load %arg4[%c0_8, %c0_9] : memref<8x128xf32, #tpu.memory_space<vmem>>, vector<8x128xf32>
    tpu.vector_store %arg4[%c0_8, %c0_9], %7 {strides = array<i32>} : memref<8x128xf32, #tpu.memory_space<vmem>>, vector<8x128xf32>,
    return
  }
}

</mosaic_0001>

<bundles_post_ra>
// kernel: tpu_custom_call.1
= control target key start
LH: loop header
LB: loop body
LE: loop exit
PB: predicated region body
PF: predicated region fallthrough
CT: control target
= control target key end

     0   :  { %9 = vsyncpa [#allocation3], 0  ;;  %s360_s0 = inlined_call_operand.hbm [shape: f32[8,8], index: 0, kind: input, shape index: {}]   ;;  %s361_s1 = inlined_call_operand.hbm [shape: f32[8,256], index: 1, kind: input, shape index: {}]   ;;  %s362_s2 = inlined_call_operand.hbm [shape: f32[256,128], index: 2, kind: input, shape index: {}]   ;;  %s363_s3 = inlined_call_operand.vmem [shape: f32[1,128], index: 3, kind: input, shape index: {}]   ;;  %s364_s4 = inlined_call_operand.hbm [shape: f32[8,128], index: 4, kind: output, shape index: {}]  }
   0x1   :  { %10 = vsyncpa [#allocation6], 0  ;;  %s28_s17 = sshll.u32 %s361_s1, 4  ;;  %s29_s17 = int_to_ptr.hbm [resolvable:$true] %s28_s17 }
   0x2   :  { %11 = vsyncpa [#allocation4], 0  ;;  %s314_s18 = smov [#allocation5]   ;;  %s17_s22 = sshll.u32 %s360_s0, 4  ;;  %s18_s22 = int_to_ptr.hbm [resolvable:$true] %s17_s22 }
   0x3   :  { %s30_s19 = sshll.u32 %s314_s18, 4  ;;  %s315_s23 = smov [#allocation2]   ;;  %s31_s19 = int_to_ptr.vmem [resolvable:$true] %s30_s19 }
   0x4   :  { %33 = dma.hbm_to_vmem [thread:$0]  %s29_s17, 256, %s31_s19, [#allocation6]  }
   0x5   :  { %s19_s24 = sshll.u32 %s315_s23, 4  ;;  %s38_s27 = sshll.u32 %s362_s2, 4  ;;  %s20_s24 = int_to_ptr.vmem [resolvable:$true] %s19_s24  ;;  %s39_s27 = int_to_ptr.hbm [resolvable:$true] %s38_s27 }
   0x6   :  { %22 = dma.hbm_to_vmem [thread:$0]  %s18_s22, 128, %s20_s24, [#allocation3]  }
   0x7   :  { %s316_s1 = smov [#allocation7]   ;;  %s317_s29 = smov 128  }
   0x8   :  { %s40_s28 = sshll.u32 %s316_s1, 4  ;;  %s318_s30 = smov 8   ;;  %s41_s28 = int_to_ptr.vmem [resolvable:$true] %s40_s28 }
   0x9   :  { %46 = dma.hbm_to_vmem [thread:$0]  %s39_s27, 4096, %s41_s28, [#allocation6], %s317_s29, %s317_s29, %s318_s30  }
   0xa   :  { %308 = dma.done.wait [#allocation3], 128  }
   0xb   :  { %309 = vsyncadd [#allocation3], 4294967168 }
   0xc   :  { %310 = dma.done.wait [#allocation6], 4352  }
   0xd   :  { %311 = vsyncadd [#allocation6], 4294962944  ;;  %vm64_vm0 = vcmask 64512   ;;  %v62_v0 = vld [vmem:[#allocation5] sm:$0xff]  ;;  %v61_v1 = vld [vmem:[#allocation2] sm:$0xff]  ;;  %s319_s5 = smov [#allocation8]  }
   0xe   :  { %v63_v2 = vld [vmem:[#allocation5 + $0x8] sm:$0xff]  ;;  %83 = vmatpush.msra.mxu0 %v62_v0  ;;  %v122_v5 = vld [vmem:[#allocation7 + $0x70] sm:$0xff]  ;;  %v121_v7 = vld [vmem:[#allocation7 + $0x68] sm:$0xff]  ;;  %s190_s6 = sshll.u32 %s319_s5, 4  ;;  %s192_s9 = sshll.u32 %s364_s4, 4  ;;  %s191_s6 = int_to_ptr.vmem [resolvable:$true] %s190_s6  ;;  %s193_s9 = int_to_ptr.hbm [resolvable:$true] %s192_s9 }
   0xf   :  { %103 = vmatpush.msra.mxu1 %v63_v2  ;;  %v123_v3 = vld [vmem:[#allocation7 + $0x78] sm:$0xff]  ;;  %203 = vmatmul.msk.f32.vlgmr.msra.gmra.mxu0 %vm64_vm0, %v61_v1  ;;  %v138_v6 = vld [vmem:[#allocation7 + $0xf0] sm:$0xff]  ;;  %v137_v8 = vld [vmem:[#allocation7 + $0xe8] sm:$0xff] }
  0x10   :  { %v139_v4 = vld [vmem:[#allocation7 + $0xf8] sm:$0xff]  ;;  %204 = vmatmul.msk.f32.vlgmr.msra.gmra.mxu1 %vm64_vm0, %v61_v1  ;;  %144 = vmatpush.msra.mxu2 %v123_v3  ;;  %v120_v9 = vld [vmem:[#allocation7 + $0x60] sm:$0xff]  ;;  %v118_v13 = vld [vmem:[#allocation7 + $0x50] sm:$0xff] }
  0x11   :  { %164 = vmatpush.msra.mxu3 %v139_v4  ;;  %v136_v10 = vld [vmem:[#allocation7 + $0xe0] sm:$0xff]  ;;  %v119_v11 = vld [vmem:[#allocation7 + $0x58] sm:$0xff]  ;;  %v134_v14 = vld [vmem:[#allocation7 + $0xd0] sm:$0xff] }
  0x12   :  { %145 = vmatpush.msra.mxu2 %v122_v5  ;;  %v135_v12 = vld [vmem:[#allocation7 + $0xd8] sm:$0xff]  ;;  %v117_v15 = vld [vmem:[#allocation7 + $0x48] sm:$0xff]  ;;  %v116_v17 = vld [vmem:[#allocation7 + $0x40] sm:$0xff] }
  0x13   :  { %165 = vmatpush.msra.mxu3 %v138_v6  ;;  %v133_v16 = vld [vmem:[#allocation7 + $0xc8] sm:$0xff]  ;;  %v132_v18 = vld [vmem:[#allocation7 + $0xc0] sm:$0xff]  ;;  %v115_v19 = vld [vmem:[#allocation7 + $0x38] sm:$0xff] }
  0x14   :  { %146 = vmatpush.msra.mxu2 %v121_v7  ;;  %v131_v20 = vld [vmem:[#allocation7 + $0xb8] sm:$0xff]  ;;  %v114_v21 = vld [vmem:[#allocation7 + $0x30] sm:$0xff]  ;;  %v113_v23 = vld [vmem:[#allocation7 + $0x28] sm:$0xff] }
  0x15   :  { %166 = vmatpush.msra.mxu3 %v137_v8  ;;  %v130_v22 = vld [vmem:[#allocation7 + $0xb0] sm:$0xff]  ;;  %v129_v24 = vld [vmem:[#allocation7 + $0xa8] sm:$0xff]  ;;  %v112_v25 = vld [vmem:[#allocation7 + $0x20] sm:$0xff] }
  0x16   :  { %147 = vmatpush.msra.mxu2 %v120_v9  ;;  %v128_v26 = vld [vmem:[#allocation7 + $0xa0] sm:$0xff]  ;;  %v111_v27 = vld [vmem:[#allocation7 + $0x18] sm:$0xff]  ;;  %v110_v29 = vld [vmem:[#allocation7 + $0x10] sm:$0xff] }
  0x17   :  { %167 = vmatpush.msra.mxu3 %v136_v10  ;;  %v127_v28 = vld [vmem:[#allocation7 + $0x98] sm:$0xff]  ;;  %v126_v30 = vld [vmem:[#allocation7 + $0x90] sm:$0xff]  ;;  %v109_v31 = vld [vmem:[#allocation7 + $0x8] sm:$0xff] }
  0x18   :  { %148 = vmatpush.msra.mxu2 %v119_v11  ;;  %v108_v32 = vld [vmem:[#allocation7] sm:$0xff]  ;;  %v125_v33 = vld [vmem:[#allocation7 + $0x88] sm:$0xff] }
  0x19   :  { %168 = vmatpush.msra.mxu3 %v135_v12  ;;  %v124_v34 = vld [vmem:[#allocation7 + $0x80] sm:$0xff]  ;;  %v211_v37 = vld [vmem:[%s363_s3] ss:$0 sm:$0xff] }
  0x1a   :  { %149 = vmatpush.msra.mxu2 %v118_v13 }
  0x1b   :  { %169 = vmatpush.msra.mxu3 %v134_v14 }
  0x1c   :  { %150 = vmatpush.msra.mxu2 %v117_v15 }
  0x1d   :  { %170 = vmatpush.msra.mxu3 %v133_v16 }
  0x1e   :  { %151 = vmatpush.msra.mxu2 %v116_v17 }
  0x1f   :  { %171 = vmatpush.msra.mxu3 %v132_v18 }
  0x20   :  { %152 = vmatpush.msra.mxu2 %v115_v19 }
  0x21   :  { %172 = vmatpush.msra.mxu3 %v131_v20 }
  0x22   :  { %153 = vmatpush.msra.mxu2 %v114_v21 }
  0x23   :  { %173 = vmatpush.msra.mxu3 %v130_v22 }
  0x24   :  { %154 = vmatpush.msra.mxu2 %v113_v23 }
  0x25   :  { %174 = vmatpush.msra.mxu3 %v129_v24 }
  0x26   :  { %155 = vmatpush.msra.mxu2 %v112_v25 }
  0x27   :  { %175 = vmatpush.msra.mxu3 %v128_v26 }
  0x28   :  { %156 = vmatpush.msra.mxu2 %v111_v27 }
  0x29   :  { %176 = vmatpush.msra.mxu3 %v127_v28 }
  0x2a   :  { %157 = vmatpush.msra.mxu2 %v110_v29 }
  0x2b   :  { %177 = vmatpush.msra.mxu3 %v126_v30 }
  0x2c   :  { %158 = vmatpush.msra.mxu2 %v109_v31 }
  0x2d   :  { %178 = vmatpush.msra.mxu3 %v125_v33 }
  0x2e   :  { %159 = vmatpush.msra.mxu2 %v108_v32 }
  0x2f   :  { %179 = vmatpush.msra.mxu3 %v124_v34 }
  0x8c   :  { %v85_v35 = vpop.f32.mrf.mxu0 }
  0x8d   :  { %v105_v36 = vpop.f32.mrf.mxu1  ;;  %160 = vmatmul.f32.vlgmr.msra.gmra.mxu2 %v85_v35 }
  0x8e   :  { %180 = vmatmul.f32.vlgmr.msra.gmra.mxu3 %v105_v36 }
 0x110   :  { %v161_v38 = vpop.f32.mrf.mxu2 }
 0x111   :  { %v181_v39 = vpop.f32.mrf.mxu3  ;;  %v162_v40 = vadd.f32 %v211_v37, %v161_v38 }
 0x113   :  { %v182_v41 = vadd.f32 %v181_v39, %v162_v40 }
 0x115   :  { %184 = vst [vmem:[#allocation8] sm:$0xff] %v182_v41 }
 0x116   :  { %195 = dma.vmem_to_hbm [thread:$0]  %s191_s6, 128, %s193_s9, [#allocation4]  }
 0x117   :  { %312 = dma.done.wait [#allocation4], 128  }
 0x118   :  { %313 = vsyncadd [#allocation4], 4294967168 }
 0x119   :  { %200 = vsyncpa [#allocation3], 1 }
 0x11a   :  { %201 = vsyncpa [#allocation6], 1 }
 0x11b   :  { %202 = vsyncpa [#allocation4], 1 }

</bundles_post_ra>
